<compile_context>
chip_gen: v6e
topology: v6e:2x2x1
jax: 0.10.0
libtpu: 0.0.40
codegen_flags: <defaults>
</compile_context>

<pallas_src>
import jax
import jax.numpy as jnp
from jax.experimental import pallas as pl
from jax.experimental.pallas import tpu as pltpu


def _round_up(x, m):
    return ((x + m - 1) // m) * m


def _cdiv(a, b):
    return -(-a // b)


def _pipeline_mode_supported():
    try:
        pl.BlockSpec((8, 128), lambda i, j: (0, 0), pipeline_mode=pl.Buffered(1))
        return True
    except (TypeError, AttributeError):
        return False


def _vmem_capacity_bytes():
    try:
        return int(pltpu.get_tpu_info().vmem_capacity_bytes)
    except Exception:
        return 64 << 20  # conservative default: v7x per-TensorCore VMEM


def _make_kernel(w2_resident):
    def kernel(x_ref, w1_ref, scale_ref, shift_ref, w2_ref, b2_ref,
               out_ref, h_ref):
        j = pl.program_id(1)

        @pl.when(j == 0)
        def _():
            # fc1 (MXU, f32 accumulation) + folded bias/BatchNorm(eval) + ReLU,
            # cached in VMEM scratch and reused for every classifier column
            # tile of this batch tile. Dropout is the identity in eval mode.
            h = jnp.dot(x_ref[...], w1_ref[...],
                        preferred_element_type=jnp.float32)
            h = h * scale_ref[...] + shift_ref[...]
            h = jnp.maximum(h, 0.0)
            h_ref[...] = h.astype(h_ref.dtype)

        # classifier tile: (block_b, H_p) @ (H_p, block_l) + b2[j]
        w2_tile = w2_ref[j] if w2_resident else w2_ref[0]   # (H_p, block_l)
        b2_tile = b2_ref[j]                                  # (1, block_l)
        logits = jnp.dot(h_ref[...], w2_tile,
                         preferred_element_type=jnp.float32)
        out_ref[...] = (logits + b2_tile).astype(out_ref.dtype)

    return kernel


def prepare_mlp_params(w1, b1, gamma, beta, running_mean, running_var, w2, b2,
                       *, eps=1e-5, compute_dtype=jnp.bfloat16, block_l=512):
    """One-time parameter prep: BN fold, pad, cast, w2 re-layout.

    w1: (D_in, H), w2: (H, L) -- pre-transposed vs torch's (out, in) layout.
    """
    D_in, H = w1.shape
    assert w2.shape[0] == H
    L = w2.shape[1]

    D_in_p = _round_up(D_in, 128)
    H_p = _round_up(H, 128)
    block_l = _round_up(min(block_l, _round_up(L, 128)), 128)
    L_p = _round_up(L, block_l)
    nL = L_p // block_l

    # BN(eval)(x @ W1 + b1) = (x @ W1) * scale + shift
    inv_std = jax.lax.rsqrt(running_var.astype(jnp.float32) + eps)
    scale = gamma.astype(jnp.float32) * inv_std
    shift = beta.astype(jnp.float32) + (
        b1.astype(jnp.float32) - running_mean.astype(jnp.float32)) * scale

    w1_p = jnp.pad(w1.astype(compute_dtype), ((0, D_in_p - D_in), (0, H_p - H)))
    scale_p = jnp.pad(scale, (0, H_p - H)).reshape(1, H_p)
    shift_p = jnp.pad(shift, (0, H_p - H)).reshape(1, H_p)

    # w2 blocked along the label axis: (nL, H_p, block_l) so the kernel can
    # either stream block j (index_map) or index a fully-resident copy with
    # w2_ref[j] (dynamic leading-axis index, cheap on TPU).
    w2_pad = jnp.pad(w2.astype(compute_dtype), ((0, H_p - H), (0, L_p - L)))
    w2_p = w2_pad.reshape(H_p, nL, block_l).transpose(1, 0, 2)
    b2_p = jnp.pad(b2.astype(jnp.float32), (0, L_p - L)).reshape(nL, 1, block_l)

    return dict(w1=w1_p, scale=scale_p, shift=shift_p, w2=w2_p, b2=b2_p,
                D_in=D_in, H=H, L=L, D_in_p=D_in_p, H_p=H_p, L_p=L_p,
                block_l=block_l, compute_dtype=jnp.dtype(compute_dtype))


def mlp_forward(x, params, *, block_b=512, out_dtype=jnp.float32,
                w2_resident=None):
    """x: (B, D_in). Returns logits (B, L) in out_dtype."""
    compute_dtype = params["compute_dtype"]
    wbytes = compute_dtype.itemsize
    obytes = jnp.dtype(out_dtype).itemsize
    D_in, L = params["D_in"], params["L"]
    D_in_p, H_p, L_p = params["D_in_p"], params["H_p"], params["L_p"]
    block_l = params["block_l"]
    nL = L_p // block_l

    B = x.shape[0]
    assert x.shape[1] == D_in

    # ---- batch tile: sublane-aligned, big enough to be MXU-bound on the
    # streamed-w2 path, but split so the "parallel" axis has >= 2 tiles for
    # v7x's two TensorCores whenever the batch allows it.
    sub = 16 if wbytes == 2 else 8
    block_b = _round_up(max(sub, min(block_b, 768)), sub)
    B_ceil = _round_up(max(B, 1), sub)
    block_b = min(block_b, B_ceil)
    if _cdiv(B_ceil, block_b) < 2 and B_ceil >= 2 * sub:
        block_b = _round_up(_cdiv(B_ceil, 2), sub)
    B_p = _round_up(B_ceil, block_b)
    grid = (B_p // block_b, nL)

    use_pm = _pipeline_mode_supported()

    # ---- VMEM budgeting (generation-aware) ----
    vmem_cap = _vmem_capacity_bytes()
    cbuf = 1 if use_pm else 2               # buffering of constant-index operands
    common = (2 * block_b * D_in_p * wbytes           # x tiles (double-buffered)
              + cbuf * D_in_p * H_p * wbytes          # w1 (resident)
              + cbuf * 2 * H_p * 4                    # BN scale / shift
              + cbuf * L_p * 4                        # b2 (resident)
              + 2 * block_b * block_l * obytes        # out tiles
              + block_b * H_p * wbytes                # hidden scratch
              + block_b * H_p * 4)                    # fc1 f32 temporary
    resident_budget = common + cbuf * H_p * L_p * wbytes
    streamed_budget = common + (3 if use_pm else 2) * H_p * block_l * wbytes

    if w2_resident is None:
        # Resident w2 removes the per-batch-tile re-stream of the dominant
        # HBM byte stream (big win on the 128 MiB parts, v5e/v6e); stream it
        # on v7x's 64 MiB VMEM instead.
        w2_resident = resident_budget <= int(0.55 * vmem_cap)
    budget = resident_budget if w2_resident else streamed_budget
    vmem_limit = min(max(int(budget * 1.25) + (2 << 20), 16 << 20),
                     int(vmem_cap * 0.85))

    cost = pl.CostEstimate(
        flops=2 * B_p * D_in_p * H_p + 2 * B_p * H_p * L_p,
        transcendentals=0,
        bytes_accessed=int(B_p * D_in_p * wbytes + D_in_p * H_p * wbytes
                           + (1 if w2_resident else grid[0]) * H_p * L_p * wbytes
                           + B_p * L_p * obytes),
    )

    x_p = jnp.pad(x.astype(compute_dtype), ((0, B_p - B), (0, D_in_p - D_in)))
    args = (x_p, params["w1"], params["scale"], params["shift"],
            params["w2"], params["b2"])

    kernel = _make_kernel(w2_resident)

    def build(pipeline_modes):
        def const_spec(shape, bufs=1):
            idx = lambda i, j, _n=len(shape): (0,) * _n
            if pipeline_modes:
                return pl.BlockSpec(shape, idx, pipeline_mode=pl.Buffered(bufs))
            return pl.BlockSpec(shape, idx)

        if w2_resident:
            w2_spec = const_spec((nL, H_p, block_l))
        elif pipeline_modes:
            # 3-deep so the w2 DMA stream stays ahead of the long (j == 0)
            # step that also carries the fc1 matmul.
            w2_spec = pl.BlockSpec((1, H_p, block_l), lambda i, j: (j, 0, 0),
                                   pipeline_mode=pl.Buffered(3))
        else:
            w2_spec = pl.BlockSpec((1, H_p, block_l), lambda i, j: (j, 0, 0))

        return pl.pallas_call(
            kernel,
            out_shape=jax.ShapeDtypeStruct((B_p, L_p), out_dtype),
            grid=grid,
            in_specs=[
                pl.BlockSpec((block_b, D_in_p), lambda i, j: (i, 0)),  # x (batch tiled)
                const_spec((D_in_p, H_p)),                             # w1 (resident)
                const_spec((1, H_p)),                                  # BN scale
                const_spec((1, H_p)),                                  # BN shift (+ b1)
                w2_spec,                                               # w2
                const_spec((nL, 1, block_l)),                          # b2 (resident)
            ],
            out_specs=pl.BlockSpec((block_b, block_l), lambda i, j: (i, j)),
            scratch_shapes=[pltpu.VMEM((block_b, H_p), compute_dtype)],
            compiler_params=pltpu.CompilerParams(
                dimension_semantics=("parallel", "arbitrary"),
                vmem_limit_bytes=vmem_limit),
            cost_estimate=cost,
        )

    try:
        out_p = build(pipeline_modes=use_pm)(*args)
    except (pltpu.LoweringException, NotImplementedError):
        if not use_pm:
            raise
        # pipeline_mode=pl.Buffered(k) rejected by this build: same math with
        # default (double-buffered) specs.
        out_p = build(pipeline_modes=False)(*args)

    return out_p[:B, :L]


def mlp_reference(x, w1, b1, gamma, beta, running_mean, running_var, w2, b2,
                  *, eps=1e-5):
    h = x @ w1 + b1
    h = (h - running_mean) * jax.lax.rsqrt(running_var + eps) * gamma + beta
    h = jnp.maximum(h, 0.0)
    return h @ w2 + b2


if __name__ == "__main__":
    # Keep the XLA reference matmuls in full f32 so tolerances are meaningful.
    jax.config.update("jax_default_matmul_precision", "highest")

    # Small shapes consistent with the module: hidden = 2 * input_size.
    B = 32           # batch
    D_IN = 32        # input_size
    H = 2 * D_IN     # hidden_size = 64
    L = 256          # num_labels

    key = jax.random.PRNGKey(0)
    ks = jax.random.split(key, 8)

    x = jax.random.normal(ks[0], (B, D_IN), dtype=jnp.float32)

    # PyTorch Linear stores weight as (out, in); we keep it pre-transposed.
    w1 = jax.random.normal(ks[1], (D_IN, H), dtype=jnp.float32) * 0.05
    b1 = jax.random.normal(ks[2], (H,), dtype=jnp.float32) * 0.05
    w2 = jax.random.normal(ks[3], (H, L), dtype=jnp.float32) * 0.05
    b2 = jax.random.normal(ks[4], (L,), dtype=jnp.float32) * 0.05

    # BatchNorm1d parameters / running stats (eval mode).
    gamma = 1.0 + 0.1 * jax.random.normal(ks[5], (H,), dtype=jnp.float32)
    beta = 0.1 * jax.random.normal(ks[6], (H,), dtype=jnp.float32)
    running_mean = 0.1 * jax.random.normal(ks[7], (H,), dtype=jnp.float32)
    running_var = jnp.ones((H,), dtype=jnp.float32) * 1.2

    ref = mlp_reference(x, w1, b1, gamma, beta, running_mean, running_var,
                        w2, b2)

    # f32-operand path (tight tolerance). block_l=128 -> 2 classifier tiles;
    # the batch tile auto-shrinks to 16 so the parallel axis has 2 tiles.
    params_f32 = prepare_mlp_params(w1, b1, gamma, beta, running_mean,
                                    running_var, w2, b2,
                                    compute_dtype=jnp.float32, block_l=128)
    out_f32 = jax.block_until_ready(mlp_forward(x, params_f32))
    assert out_f32.shape == (B, L)
    assert jnp.allclose(out_f32, ref, atol=2e-3, rtol=2e-3), \
        "f32 mismatch vs reference"

    # bf16 MXU operands (default fast path), both w2 residency variants.
    params_bf16 = prepare_mlp_params(w1, b1, gamma, beta, running_mean,
                                     running_var, w2, b2,
                                     compute_dtype=jnp.bfloat16, block_l=128)
    out_res = jax.block_until_ready(
        mlp_forward(x, params_bf16, w2_resident=True))
    out_str = jax.block_until_ready(
        mlp_forward(x, params_bf16, w2_resident=False))
    assert out_res.shape == (B, L) and out_str.shape == (B, L)
    assert jnp.allclose(out_res, ref, atol=5e-2, rtol=5e-2), \
        "bf16 (resident w2) mismatch vs reference"
    assert jnp.allclose(out_str, ref, atol=5e-2, rtol=5e-2), \
        "bf16 (streamed w2) mismatch vs reference"

    # Optional bf16 logits output (halves logits writeback).
    out_b16 = jax.block_until_ready(
        mlp_forward(x, params_bf16, out_dtype=jnp.bfloat16))
    assert out_b16.dtype == jnp.bfloat16
    assert jnp.allclose(out_b16.astype(jnp.float32), ref, atol=1e-1, rtol=1e-1), \
        "bf16-output mismatch vs reference"

    print("KERNEL_OK")
</pallas_src>

<mosaic_0001>
module attributes {stable_mosaic.version = 11 : i64} {
  func.func @kernel(%arg0: i32, %arg1: i32, %arg2: memref<16x128xf32, #tpu.memory_space<vmem>>, %arg3: memref<128x128xf32, #tpu.memory_space<vmem>>, %arg4: memref<1x128xf32, #tpu.memory_space<vmem>>, %arg5: memref<1x128xf32, #tpu.memory_space<vmem>>, %arg6: memref<2x128x128xf32, #tpu.memory_space<vmem>>, %arg7: memref<2x1x128xf32, #tpu.memory_space<vmem>>, %arg8: memref<16x128xf32, #tpu.memory_space<vmem>>, %arg9: memref<16x128xf32, #tpu.memory_space<vmem>>) attributes {dimension_semantics = [#tpu.dimension_semantics<parallel>, #tpu.dimension_semantics<arbitrary>], iteration_bounds = array<i64: 2, 2>, scalar_prefetch = 0 : i64, scratch_operands = 1 : i64, tpu.core_type = #tpu.core_type<tc>, window_params = [{transform_indices = @transform_0, window_bounds = array<i64: 16, 128>}, {pipeline_mode = #tpu.pipeline_mode<synchronous>, transform_indices = @transform_1, window_bounds = array<i64: 128, 128>}, {pipeline_mode = #tpu.pipeline_mode<synchronous>, transform_indices = @transform_2, window_bounds = array<i64: 1, 128>}, {pipeline_mode = #tpu.pipeline_mode<synchronous>, transform_indices = @transform_3, window_bounds = array<i64: 1, 128>}, {pipeline_mode = #tpu.pipeline_mode<synchronous>, transform_indices = @transform_4, window_bounds = array<i64: 2, 128, 128>}, {pipeline_mode = #tpu.pipeline_mode<synchronous>, transform_indices = @transform_5, window_bounds = array<i64: 2, 1, 128>}, {transform_indices = @transform_6, window_bounds = array<i64: 16, 128>}]} {
    %c0_i32 = arith.constant 0 : i32
    %0 = arith.cmpi eq, %arg1, %c0_i32 : i32
    %1 = arith.extui %0 : i1 to i32
    %c0_i32_0 = arith.constant 0 : i32
    %2 = arith.cmpi ne, %1, %c0_i32_0 : i32
    scf.if %2 {
      %c0_8 = arith.constant 0 : index
      %c0_9 = arith.constant 0 : index
      %14 = vector.load %arg2[%c0_8, %c0_9] : memref<16x128xf32, #tpu.memory_space<vmem>>, vector<16x128xf32>
      %c0_10 = arith.constant 0 : index
      %c0_11 = arith.constant 0 : index
      %15 = vector.load %arg3[%c0_10, %c0_11] : memref<128x128xf32, #tpu.memory_space<vmem>>, vector<128x128xf32>
      %cst_12 = arith.constant dense<0.000000e+00> : vector<16x128xf32>
      %16 = tpu.matmul %14, %15, %cst_12 {dimension_numbers = #tpu.dot_dimension_numbers<[1], [0], [0], [1], [0, 0, 1, 1], [], []>, precision = #tpu.contract_precision<fp32>} : vector<16x128xf32>, vector<128x128xf32>, vector<16x128xf32> -> vector<16x128xf32>
      %c0_13 = arith.constant 0 : index
      %c0_14 = arith.constant 0 : index
      %17 = vector.load %arg4[%c0_13, %c0_14] : memref<1x128xf32, #tpu.memory_space<vmem>>, vector<1x128xf32>
      %18 = vector.broadcast %17 : vector<1x128xf32> to vector<16x128xf32>
      %19 = arith.mulf %16, %18 : vector<16x128xf32>
      %c0_15 = arith.constant 0 : index
      %c0_16 = arith.constant 0 : index
      %20 = vector.load %arg5[%c0_15, %c0_16] : memref<1x128xf32, #tpu.memory_space<vmem>>, vector<1x128xf32>
      %21 = vector.broadcast %20 : vector<1x128xf32> to vector<16x128xf32>
      %22 = arith.addf %19, %21 : vector<16x128xf32>
      %cst_17 = arith.constant 0.000000e+00 : f32
      %23 = vector.broadcast %cst_17 : f32 to vector<16x128xf32>
      %24 = arith.maximumf %22, %23 : vector<16x128xf32>
      %c0_18 = arith.constant 0 : index
      %c0_19 = arith.constant 0 : index
      %25 = vector.load %arg9[%c0_18, %c0_19] : memref<16x128xf32, #tpu.memory_space<vmem>>, vector<16x128xf32>
      tpu.vector_store %arg9[%c0_18, %c0_19], %24 {strides = array<i32>} : memref<16x128xf32, #tpu.memory_space<vmem>>, vector<16x128xf32>,
    } else {
    }
    %3 = arith.index_cast %arg1 : i32 to index
    %c0 = arith.constant 0 : index
    %c0_1 = arith.constant 0 : index
    %4 = vector.load %arg6[%3, %c0, %c0_1] : memref<2x128x128xf32, #tpu.memory_space<vmem>>, vector<1x128x128xf32>
    %5 = vector.shape_cast %4 : vector<1x128x128xf32> to vector<128x128xf32>
    %6 = arith.index_cast %arg1 : i32 to index
    %c0_2 = arith.constant 0 : index
    %c0_3 = arith.constant 0 : index
    %7 = vector.load %arg7[%6, %c0_2, %c0_3] : memref<2x1x128xf32, #tpu.memory_space<vmem>>, vector<1x1x128xf32>
    %8 = vector.shape_cast %7 : vector<1x1x128xf32> to vector<1x128xf32>
    %c0_4 = arith.constant 0 : index
    %c0_5 = arith.constant 0 : index
    %9 = vector.load %arg9[%c0_4, %c0_5] : memref<16x128xf32, #tpu.memory_space<vmem>>, vector<16x128xf32>
    %cst = arith.constant dense<0.000000e+00> : vector<16x128xf32>
    %10 = tpu.matmul %9, %5, %cst {dimension_numbers = #tpu.dot_dimension_numbers<[1], [0], [0], [1], [0, 0, 1, 1], [], []>, precision = #tpu.contract_precision<fp32>} : vector<16x128xf32>, vector<128x128xf32>, vector<16x128xf32> -> vector<16x128xf32>
    %11 = vector.broadcast %8 : vector<1x128xf32> to vector<16x128xf32>
    %12 = arith.addf %10, %11 : vector<16x128xf32>
    %c0_6 = arith.constant 0 : index
    %c0_7 = arith.constant 0 : index
    %13 = vector.load %arg8[%c0_6, %c0_7] : memref<16x128xf32, #tpu.memory_space<vmem>>, vector<16x128xf32>
    tpu.vector_store %arg8[%c0_6, %c0_7], %12 {strides = array<i32>} : memref<16x128xf32, #tpu.memory_space<vmem>>, vector<16x128xf32>,
    return
  }
  func.func @transform_0(%arg0: i32, %arg1: i32) -> (i32, i32) {
    %c0_i32 = arith.constant 0 : i32
    %c0_i32_0 = arith.constant 0 : i32
    return %arg0, %c0_i32 : i32, i32
  }
  func.func @transform_1(%arg0: i32, %arg1: i32) -> (i32, i32) {
    %c0_i32 = arith.constant 0 : i32
    %c0_i32_0 = arith.constant 0 : i32
    %c0_i32_1 = arith.constant 0 : i32
    return %c0_i32, %c0_i32_0 : i32, i32
  }
  func.func @transform_2(%arg0: i32, %arg1: i32) -> (i32, i32) {
    %c0_i32 = arith.constant 0 : i32
    %c0_i32_0 = arith.constant 0 : i32
    %c0_i32_1 = arith.constant 0 : i32
    return %c0_i32, %c0_i32_0 : i32, i32
  }
  func.func @transform_3(%arg0: i32, %arg1: i32) -> (i32, i32) {
    %c0_i32 = arith.constant 0 : i32
    %c0_i32_0 = arith.constant 0 : i32
    %c0_i32_1 = arith.constant 0 : i32
    return %c0_i32, %c0_i32_0 : i32, i32
  }
  func.func @transform_4(%arg0: i32, %arg1: i32) -> (i32, i32, i32) {
    %c0_i32 = arith.constant 0 : i32
    %c0_i32_0 = arith.constant 0 : i32
    %c0_i32_1 = arith.constant 0 : i32
    %c0_i32_2 = arith.constant 0 : i32
    return %c0_i32, %c0_i32_0, %c0_i32_1 : i32, i32, i32
  }
  func.func @transform_5(%arg0: i32, %arg1: i32) -> (i32, i32, i32) {
    %c0_i32 = arith.constant 0 : i32
    %c0_i32_0 = arith.constant 0 : i32
    %c0_i32_1 = arith.constant 0 : i32
    %c0_i32_2 = arith.constant 0 : i32
    return %c0_i32, %c0_i32_0, %c0_i32_1 : i32, i32, i32
  }
  func.func @transform_6(%arg0: i32, %arg1: i32) -> (i32, i32) {
    %c0_i32 = arith.constant 0 : i32
    return %arg0, %arg1 : i32, i32
  }
}

</mosaic_0001>

<bundles_post_ra>
// kernel: tpu_custom_call.1
= control target key start
LH: loop header
LB: loop body
LE: loop exit
PB: predicated region body
PF: predicated region fallthrough
CT: control target
= control target key end

     0   :  { %s3918_s0 = inlined_call_operand.hbm [shape: f32[32,128], index: 0, kind: input, shape index: {}]   ;;  %s3919_s1 = inlined_call_operand.hbm [shape: f32[128,128], index: 1, kind: input, shape index: {}]   ;;  %s3920_s2 = inlined_call_operand.vmem [shape: f32[1,128], index: 2, kind: input, shape index: {}]   ;;  %s3921_s3 = inlined_call_operand.vmem [shape: f32[1,128], index: 3, kind: input, shape index: {}]   ;;  %s3922_s4 = inlined_call_operand.hbm [shape: f32[2,128,128], index: 4, kind: input, shape index: {}]   ;;  %s3923_s5 = inlined_call_operand.vmem [shape: f32[2,1,128], index: 5, kind: input, shape index: {}]   ;;  %s3924_s6 = inlined_call_operand.hbm [shape: f32[32,256], index: 6, kind: output, shape index: {}]  }
   0x1   :  { %3938 = sst [smem:[#allocation19_spill]] %s3919_s1 }
   0x2   :  { %3939 = sst [smem:[#allocation20_spill]] %s3922_s4 }
   0x3   :  { %3940 = sst [smem:[#allocation21_spill]] %s3923_s5 }
   0x4   :  { %3941 = sst [smem:[#allocation22_spill]] %s3924_s6 }
   0x5   :  { %11 = vsyncpa [#allocation4], 0 }
   0x6   :  { %13 = vsyncpa [#allocation4 + $0x1], 0 }
   0x7   :  { %14 = vsyncpa [#allocation7], 0 }
   0x8   :  { %15 = vsyncpa [#allocation5], 0 }
   0x9   :  { %17 = vsyncpa [#allocation5 + $0x1], 0  ;;  %s2922_s21 = smov 0   ;;  %s2924_s22 = smov 0  }
   0xa   :  { %s2926_s23 = smov 0   ;;  %s2928_s24 = smov 0  }
   0xb   :  { %s2930_s25 = smov 0   ;;  %s2932_s26 = smov 0  }
   0xc   :  { %s2934_s27 = smov 0   ;;  %s2936_s28 = smov 0  }
   0xd   :  { %s2938_s29 = smov 0   ;;  %s2940_s30 = smov 0  }
   0xe   :  { %s2942_s7 = smov 0  }
   0xf LB: > { %3942 = sst [smem:[#allocation13_spill]] %s2836_s21  ;;  %s1881_s8 = sadd.s32 4294967295, %s2876_s7   ;;  %s2876_s7 = sphi %s2942_s7, %s23_s7   ;;  %s2872_s30 = sphi %s2940_s30, %s3982_s30   ;;  %s2868_s29 = sphi %s2938_s29, %s3981_s29   ;;  %s2864_s28 = sphi %s2936_s28, %s3980_s28   ;;  %s2860_s27 = sphi %s2934_s27, %s3972_s27   ;;  %s2856_s26 = sphi %s2932_s26, %s3979_s26   ;;  %s2852_s25 = sphi %s2930_s25, %s3978_s25   ;;  %s2848_s24 = sphi %s2928_s24, %s3977_s24   ;;  %s2844_s23 = sphi %s2926_s23, %s3976_s23   ;;  %s2840_s22 = sphi %s2924_s22, %s3975_s22   ;;  %s2836_s21 = sphi %s2922_s21, %s3974_s21  }
  0x10   : > { %3943 = sst [smem:[#allocation14_spill]] %s2864_s28  ;;  %s1882_s9 = sadd.s32 4294967294, %s2876_s7  }
  0x11   : > { %3944 = sst [smem:[#allocation15_spill]] %s2868_s29  ;;  %p55_p0 = scmp.ne.s32.totalorder %s2852_s25, %s2848_s24 }
  0x12   : > { %p2978_p1 = scmp.eq.s32.totalorder %s1881_s8, 0  ;;  %p185_p2 = scmp.ne.s32.totalorder %s2844_s23, %s2840_s22 }
  0x13   : > { %p186_p4 = scmp.eq.s32.totalorder %s1881_s8, 3  ;;  %p191_p5 = scmp.ne.s32.totalorder %s2840_s22, %s2836_s21 }
  0x14   : > { %p2987_p3 = por %p2978_p1, %p55_p0  ;;  %p192_p6 = scmp.eq.s32.totalorder %s1882_s9, 3 }
  0x15   : > { %p2993_p7 = por %p186_p4, %p185_p2  ;;  %p1883_p8 = scmp.ge.s32.totalorder %s2876_s7, 1 }
  0x16   : > { %p2998_p9 = por %p192_p6, %p191_p5  ;;  %p199_p10 = scmp.lt.s32.totalorder %s2876_s7, 5 }
  0x17   : > { %s3947_s13 = scalar_select %p2993_p7, 1, 0 }
  0x18   : > { %s3949_s14 = scalar_select %p2998_p9, 1, 0 }
  0x19   : > { %3948 = sst [smem:[#allocation16_spill]] %s3947_s13  ;;  %p3003_p11 = pnand %p1883_p8, %p199_p10 }
  0x1a   : > { %3950 = sst [smem:[#allocation17_spill]] %s3949_s14  ;;  %s2878_s16 = smov [#allocation6]  }
  0x1b   : > { %s211_s17 = sshll.u32 %s2878_s16, 4  ;;  %p2556_p12 = pneg %p3003_p11  ;;  %s212_s17 = int_to_ptr.vmem [resolvable:$true] %s211_s17 }
  0x1c   : > { %s2879_s19 = smov [#allocation8]   ;;  %s2683_s24 = scalar_lea.vmem %s212_s17, 2048 }
  0x1d   : > { %p3011_p13 = pnand %p2556_p12, %p2978_p1  ;;  %s230_s20 = sshll.u32 %s2879_s19, 4  ;;  %s231_s20 = int_to_ptr.vmem [resolvable:$true] %s230_s20 }
  0x1e   : > { %p2684_p2 = scmp.ne.s32.totalorder %s212_s17, %s2683_s24  ;;  %p2691_p6 = scmp.lt.s32.totalorder %s212_s17, %s212_s17 }
  0x1f   : > { %p2674_p0 = pneg %p3011_p13  ;;  %p2692_p8 = scmp.lt.s32.totalorder %s2683_s24, %s2683_s24 }
  0x21   : > { %p2686_p4 = pnand %p2684_p2, %p2674_p0  ;;  %p2693_p10 = por %p2692_p8, %p2691_p6 }
  0x23   : > { %p2687_p5 = pneg %p2686_p4 }
  0x25   : > { %p2694_p12 = pnand %p2693_p10, %p2687_p5 }
  0x27   : > { %2697 = shalt.err (!%p2694_p12)
}
  0x28   : > { %s3926_s8 = smov 128   ;;  %s3927_s9 = smov 8  }
  0x29   : > { %s3953_s1 = sld [smem:[#allocation19_spill]]  ;;  %s2709_s11 = scalar_lea.vmem %s231_s20, 4096 }
  0x2a   : > { %p2710_p2 = scmp.ne.s32.totalorder %s231_s20, %s2709_s11  ;;  %p2717_p5 = scmp.lt.s32.totalorder %s231_s20, %s231_s20 }
  0x2b   : > { %p2718_p8 = scmp.lt.s32.totalorder %s2709_s11, %s2709_s11 }
  0x2c   : > { %p2712_p4 = pnand %p2710_p2, %p2674_p0 }
  0x2d   : > { %p2719_p10 = por %p2718_p8, %p2717_p5 }
  0x2e   : > { %p2713_p6 = pneg %p2712_p4 }
  0x2f   : > { %2559 = dma.hbm_to_vmem [thread:$0]  (!%p3011_p13), %s3953_s1, 2048, %s212_s17, [#allocation7], %s3926_s8, %s3926_s8, %s3927_s9  }
  0x30   : > { %p2720_p12 = pnand %p2719_p10, %p2713_p6 }
  0x32   : > { %2723 = shalt.err (!%p2720_p12)
}
  0x33   : > { %s3954_s4 = sld [smem:[#allocation20_spill]]  ;;  %s32_s11 = sadd.s32 1, %s2868_s29 }
  0x34   : > { %s35_s17 = sadd.s32 1, %s2872_s30  ;;  %p33_p0 = scmp.ge.s32.totalorder %s32_s11, 2 }
  0x35   : > { %s42_s18 = sadd.s32 1, %s2856_s26  ;;  %p49_p2 = scmp.ne.s32.totalorder %s2856_s26, %s2852_s25 }
  0x36   : > { %p50_p4 = scmp.eq.s32.totalorder %s2876_s7, 0  ;;  %s3984_s11 = smov (%p33_p0, %s32_s11), 0 }
  0x37   : > { %3955 = sst [smem:[#allocation18_spill]] %s3984_s11  ;;  %s3986_s17 = smov (!%p33_p0, %s35_s17), %s2872_s30 }
  0x38   : > { %p3048_p6 = por %p50_p4, %p49_p2  ;;  %s171_s16 = ssub.s32 %s2868_s29, %s3984_s11 }
  0x39   : > { %2562 = dma.hbm_to_vmem [thread:$0]  (!%p3011_p13), %s3954_s4, 4096, %s231_s20, [#allocation7], %s3926_s8, %s3926_s8, %s3927_s9  }
  0x3a   : > { %p37_p13 = scmp.ge.s32.totalorder %s3986_s17, 2  ;;  %p2573_p5 = scmp.lt.s32.totalorder %s2876_s7, 4 }
  0x3b   : > { %s247_s20 = sand.u32 1, %s2856_s26   ;;  %s1906_s19 = sshll.u32 %s2872_s30, 8 }
  0x3c   : > { %s3988_s17 = smov (%p37_p13, %s3986_s17), 0  ;;  %s1887_s24 = sshll.u32 %s247_s20, 4 }
  0x3d   : > { %s39_s8 = ssub.s32 %s2872_s30, %s3988_s17  ;;  %s257_s21 = scalar_lea.hbm %s3918_s0, %s1906_s19 }
  0x3e   : > { %p40_p8 = scmp.eq.s32.totalorder %s39_s8, 0  ;;  %s172_s9 = sor.u32 %s171_s16, %s39_s8 }
  0x3f   : > { %p173_p10 = scmp.eq.s32.totalorder %s172_s9, 0  ;;  %s3957_s11 = sadd.s32 1, %s2844_s23 }
  0x40   : > { %s3065_s6 = scalar_select %p40_p8, %s2856_s26, %s42_s18  }
  0x41   : > { %s3070_s29 = scalar_select %p173_p10, %s2844_s23, %s3957_s11  }
  0x42   : > { %s251_s13 = scalar_lea.vmem [#allocation3], %s1887_s24  ;;  %p3076_p12 = pnand %p2573_p5, %p3048_p6 }
  0x43   : > { %s258_s5 = sshll.u32 %s251_s13, 4  ;;  %s248_s8 = scalar_lea.sflag [#allocation4], %s247_s20  ;;  %s259_s5 = int_to_ptr.vmem [resolvable:$true] %s258_s5 }
  0x44   : > { %p2726_p0 = pneg %p3076_p12  ;;  %s2737_s1 = scalar_lea.vmem %s259_s5, 256 }
  0x45   : > { %p2738_p2 = scmp.ne.s32.totalorder %s259_s5, %s2737_s1  ;;  %s2882_s4 = smov [#allocation3]  }
  0x46   : > { %s2742_s9 = sshll.u32 %s2882_s4, 4  ;;  %s2743_s9 = int_to_ptr.vmem [resolvable:$false] %s2742_s9 }
  0x47   : > { %p2740_p4 = pnand %p2738_p2, %p2726_p0  ;;  %s2744_s11 = scalar_lea.vmem %s2743_s9, 512 }
  0x48   : > { %p2745_p8 = scmp.lt.s32.totalorder %s259_s5, %s2743_s9  ;;  %p2746_p10 = scmp.lt.s32.totalorder %s2744_s11, %s2737_s1 }
  0x49   : > { %p2741_p13 = pneg %p2740_p4 }
  0x4a   : > { %p2747_p9 = por %p2746_p10, %p2745_p8 }
  0x4c   : > { %p2748_p6 = pnand %p2747_p9, %p2741_p13 }
  0x4e   : > { %2751 = shalt.err (!%p2748_p6)
}
  0x4f   : > { %s3959_s13 = smov 8   ;;  %s3960_s18 = smov 128  }
  0x50   : > { %2566 = dma.hbm_to_vmem [thread:$0]  (!%p3076_p12), %s257_s21, 256, %s259_s5, %s248_s8, %s3960_s18, %s3960_s18, %s3959_s13  }
  0x51   : > { %270 = sbr.rel (%p3003_p11) target bundleno = 737 (0x2e1), region = 44  ;;  %s272_s14 = sand.u32 (!%p3003_p11), 1, %s2852_s25  }
  0x52   : > { %s3090_s16 = sshll.u32 (!%p3003_p11), %s272_s14, 4  ;;  %s273_s20 = scalar_lea.sflag (!%p3003_p11), [#allocation4], %s272_s14 }
  0x53   : > { %s276_s19 = scalar_lea.vmem (!%p3003_p11), [#allocation3], %s3090_s16 }
  0x56   : > { %2823 = dma.done.wait (%p2987_p3), %s273_s20, 256  }
  0x57   : > { %2825 = vsyncadd (%p2987_p3), %s273_s20, 4294967040 }
  0x58   : > { %2827 = dma.done.wait (%p2978_p1), [#allocation7], 6144  }
  0x59   : > { %2829 = vsyncadd (%p2978_p1), [#allocation7], 4294961152  ;;  %s310_s5 = sand.u32 1, %s2840_s22   ;;  %p1895_p9 = scmp.ne.s32.totalorder %s2860_s27, 0 }
  0x5a   : > { %s1894_s21 = sshll.u32 %s310_s5, 4 }
  0x5b   : > { %s3104_s28 = scalar_lea.vmem [#allocation9], %s1894_s21  ;;  %318 = sbr.rel (%p1895_p9) target bundleno = 412 (0x19c), region = 60 }
  0x60   : > { %v336_v0 = vld [vmem:[#allocation6 + $0x78] sm:$0xff]  ;;  %v335_v1 = vld [vmem:[#allocation6 + $0x70] sm:$0xff]  ;;  %v334_v2 = vld [vmem:[#allocation6 + $0x68] sm:$0xff] }
  0x61   : > { %v3107_v3 = vand.u32 4294901760, %v336_v0  ;;  %v3109_v4 = vand.u32 4294901760, %v335_v1  ;;  %v3111_v5 = vand.u32 4294901760, %v334_v2  ;;  %v333_v6 = vld [vmem:[#allocation6 + $0x60] sm:$0xff]  ;;  %v332_v7 = vld [vmem:[#allocation6 + $0x58] sm:$0xff]  ;;  %v331_v8 = vld [vmem:[#allocation6 + $0x50] sm:$0xff] }
  0x62   : > { %v3113_v9 = vand.u32 4294901760, %v333_v6  ;;  %v3115_v10 = vand.u32 4294901760, %v332_v7  ;;  %v3117_v11 = vand.u32 4294901760, %v331_v8  ;;  %v330_v12 = vld [vmem:[#allocation6 + $0x48] sm:$0xff]  ;;  %v329_v13 = vld [vmem:[#allocation6 + $0x40] sm:$0xff]  ;;  %v328_v18 = vld [vmem:[#allocation6 + $0x38] sm:$0xff] }
  0x63   : > { %2124 = vmatprep.subr.mxu0 %v3107_v3  ;;  %v3121_v14 = vsub.f32 %v336_v0, %v3107_v3  ;;  %v3124_v15 = vsub.f32 %v335_v1, %v3109_v4  ;;  %v3126_v16 = vand.u32 4294901760, %v330_v12  ;;  %v3129_v17 = vsub.f32 %v334_v2, %v3111_v5  ;;  %v327_v25 = vld [vmem:[#allocation6 + $0x30] sm:$0xff]  ;;  %v326_v35 = vld [vmem:[#allocation6 + $0x28] sm:$0xff]  ;;  %v325_v40 = vld [vmem:[#allocation6 + $0x20] sm:$0xff] }
  0x64   : > { %2125 = vmatpush3.msra.mxu0 %v3107_v3  ;;  %v3133_v19 = vsub.f32 %v333_v6, %v3113_v9  ;;  %v3136_v20 = vsub.f32 %v332_v7, %v3115_v10  ;;  %v3148_v24 = vand.u32 4294901760, %v329_v13  ;;  %v3154_v27 = vand.u32 4294901760, %v328_v18  ;;  %v324_v48 = vld [vmem:[#allocation6 + $0x18] sm:$0xff]  ;;  %v319_v49 = vld [vmem:[%s276_s19] sm:$0xff]  ;;  %v322_v2 = vld [vmem:[#allocation6 + $0x8] sm:$0xff] }
  0x65   : > { %2126 = vmatprep.subr.mxu0 %v3109_v4  ;;  %v3140_v21 = vand.u32 4294901760, %v3121_v14  ;;  %v3143_v22 = vand.u32 4294901760, %v3124_v15  ;;  %v3146_v23 = vand.u32 4294901760, %v3129_v17  ;;  %v3160_v29 = vsub.f32 %v331_v8, %v3117_v11  ;;  %v320_v54 = vld [vmem:[%s276_s19 + $0x8] sm:$0xff]  ;;  %v323_v59 = vld [vmem:[#allocation6 + $0x10] sm:$0xff] }
  0x66   : > { %2127 = vmatpush3.msra.mxu0 %v3109_v4  ;;  %v3152_v26 = vand.u32 4294901760, %v3133_v19  ;;  %v3157_v28 = vand.u32 4294901760, %v3136_v20  ;;  %v3170_v33 = vsub.f32 %v330_v12, %v3126_v16  ;;  %v3173_v34 = vand.u32 4294901760, %v327_v25 }
  0x67   : > { %2128 = vmatprep.subr.mxu0 %v3111_v5  ;;  %v442_v30 = vsub.f32 %v3121_v14, %v3140_v21  ;;  %v449_v31 = vsub.f32 %v3124_v15, %v3143_v22  ;;  %v456_v32 = vsub.f32 %v3129_v17, %v3146_v23  ;;  %v3179_v39 = vand.u32 4294901760, %v3160_v29 }
  0x68   : > { %2129 = vmatpush3.msra.mxu0 %v3111_v5  ;;  %v463_v38 = vsub.f32 %v3133_v19, %v3152_v26  ;;  %v470_v41 = vsub.f32 %v3136_v20, %v3157_v28  ;;  %v3185_v42 = vand.u32 4294901760, %v3170_v33  ;;  %v3188_v43 = vsub.f32 %v329_v13, %v3148_v24 }
  0x69   : > { %2130 = vmatprep.subr.mxu0 %v3113_v9  ;;  %v443_v36 = vand.u32 4294901760, %v442_v30  ;;  %v450_v37 = vand.u32 4294901760, %v449_v31  ;;  %v457_v44 = vand.u32 4294901760, %v456_v32  ;;  %v3191_v45 = vand.u32 4294901760, %v326_v35 }
  0x6a   : > { %2131 = vmatpush3.msra.mxu0 %v3113_v9  ;;  %v3194_v46 = vsub.f32 %v328_v18, %v3154_v27  ;;  %v3197_v47 = vand.u32 4294901760, %v325_v40  ;;  %v464_v50 = vand.u32 4294901760, %v463_v38  ;;  %v477_v51 = vsub.f32 %v3160_v29, %v3179_v39  ;;  %v321_v18 = vld [vmem:[#allocation6] sm:$0xff] }
  0x6b   : > { %2132 = vmatprep.subr.mxu0 %v3115_v10  ;;  %2159 = vmatprep.subr.mxu1 %v443_v36  ;;  %v3205_v52 = vand.u32 4294901760, %v3188_v43  ;;  %v3208_v53 = vsub.f32 %v327_v25, %v3173_v34  ;;  %v471_v55 = vand.u32 4294901760, %v470_v41  ;;  %v484_v56 = vsub.f32 %v3170_v33, %v3185_v42 }
  0x6c   : > { %2133 = vmatpush3.msra.mxu0 %v3115_v10  ;;  %2160 = vmatpush3.msra.mxu1 %v443_v36  ;;  %v3216_v57 = vand.u32 4294901760, %v324_v48  ;;  %v3219_v58 = vand.u32 4294901760, %v3194_v46  ;;  %v3222_v60 = vsub.f32 %v326_v35, %v3191_v45  ;;  %v3224_v61 = vand.u32 4294901760, %v319_v49 }
  0x6d   : > { %2134 = vmatprep.subr.mxu0 %v3117_v11  ;;  %2161 = vmatprep.subr.mxu1 %v450_v37  ;;  %v3227_v62 = vand.u32 4294901760, %v320_v54  ;;  %v478_v63 = vand.u32 4294901760, %v477_v51  ;;  %v491_v0 = vsub.f32 %v3188_v43, %v3205_v52  ;;  %v3233_v1 = vand.u32 4294901760, %v3208_v53 }
  0x6e   : > { %2135 = vmatpush3.msra.mxu0 %v3117_v11  ;;  %2162 = vmatpush3.msra.mxu1 %v450_v37  ;;  %v3236_v6 = vsub.f32 %v325_v40, %v3197_v47  ;;  %v485_v7 = vand.u32 4294901760, %v484_v56  ;;  %v3239_v8 = vand.u32 4294901760, %v323_v59  ;;  %v498_v12 = vsub.f32 %v3194_v46, %v3219_v58 }
  0x6f   : > { %2136 = vmatprep.subr.mxu0 %v3126_v16  ;;  %2163 = vmatprep.subr.mxu1 %v457_v44  ;;  %v3245_v13 = vand.u32 4294901760, %v3222_v60  ;;  %v3248_v25 = vsub.f32 %v319_v49, %v3224_v61  ;;  %v3251_v30 = vsub.f32 %v324_v48, %v3216_v57  ;;  %v3254_v31 = vand.u32 4294901760, %v322_v2 }
  0x70   : > { %2137 = vmatpush3.msra.mxu0 %v3126_v16  ;;  %2164 = vmatpush3.msra.mxu1 %v457_v44  ;;  %v3257_v32 = vsub.f32 %v320_v54, %v3227_v62  ;;  %v492_v35 = vand.u32 4294901760, %v491_v0  ;;  %v505_v36 = vsub.f32 %v3208_v53, %v3233_v1  ;;  %v3263_v37 = vand.u32 4294901760, %v3236_v6 }
  0x71   : > { %2138 = vmatprep.subr.mxu0 %v3148_v24  ;;  %2165 = vmatprep.subr.mxu1 %v464_v50  ;;  %v3266_v38 = vand.u32 4294901760, %v321_v18  ;;  %v3269_v40 = vsub.f32 %v323_v59, %v3239_v8  ;;  %v499_v41 = vand.u32 4294901760, %v498_v12  ;;  %v512_v44 = vsub.f32 %v3222_v60, %v3245_v13 }
  0x72   : > { %2139 = vmatpush3.msra.mxu0 %v3148_v24  ;;  %2166 = vmatpush3.msra.mxu1 %v464_v50  ;;  %v3935_v48 = vand.u32 4294901760, %v3248_v25  ;;  %v3276_v49 = vand.u32 4294901760, %v3251_v30  ;;  %v3934_v50 = vand.u32 4294901760, %v3257_v32  ;;  %v3281_v51 = vsub.f32 %v322_v2, %v3254_v31 }
  0x73   : > { %2140 = vmatprep.subr.mxu0 %v3154_v27  ;;  %2167 = vmatprep.subr.mxu1 %v471_v55  ;;  %v506_v54 = vand.u32 4294901760, %v505_v36  ;;  %v3288_v56 = vand.u32 4294901760, %v3269_v40  ;;  %v3291_v59 = vsub.f32 %v321_v18, %v3266_v38 }
  0x74   : > { %2141 = vmatpush3.msra.mxu0 %v3154_v27  ;;  %2168 = vmatpush3.msra.mxu1 %v471_v55  ;;  %v519_v55 = vsub.f32 %v3236_v6, %v3263_v37  ;;  %v421_v0 = vsub.f32 %v3248_v25, %v3935_v48  ;;  %v526_v2 = vsub.f32 %v3251_v30, %v3276_v49  ;;  %v3304_v12 = vand.u32 4294901760, %v3281_v51 }
  0x75   : > { %2142 = vmatprep.subr.mxu0 %v3173_v34  ;;  %2169 = vmatprep.subr.mxu1 %v478_v63  ;;  %v3311_v36 = vand.u32 4294901760, %v3291_v59 }
  0x76   : > { %2143 = vmatpush3.msra.mxu0 %v3173_v34  ;;  %2170 = vmatpush3.msra.mxu1 %v478_v63  ;;  %v513_v63 = vand.u32 4294901760, %v512_v44  ;;  %v520_v18 = vand.u32 4294901760, %v519_v55  ;;  %v527_v44 = vand.u32 4294901760, %v526_v2  ;;  %v540_v55 = vsub.f32 %v3281_v51, %v3304_v12 }
  0x77   : > { %2144 = vmatprep.subr.mxu0 %v3191_v45  ;;  %2171 = vmatprep.subr.mxu1 %v485_v7  ;;  %v547_v48 = vsub.f32 %v3291_v59, %v3311_v36 }
  0x78   : > { %2145 = vmatpush3.msra.mxu0 %v3191_v45  ;;  %2172 = vmatpush3.msra.mxu1 %v485_v7  ;;  %v431_v7 = vsub.f32 %v3257_v32, %v3934_v50 }
  0x79   : > { %2146 = vmatprep.subr.mxu0 %v3197_v47  ;;  %2173 = vmatprep.subr.mxu1 %v492_v35 }
  0x7a   : > { %2147 = vmatpush3.msra.mxu0 %v3197_v47  ;;  %2174 = vmatpush3.msra.mxu1 %v492_v35  ;;  %v533_v35 = vsub.f32 %v3269_v40, %v3288_v56  ;;  %v432_v50 = vand.u32 4294901760, %v431_v7 }
  0x7b   : > { %2148 = vmatprep.subr.mxu0 %v3216_v57  ;;  %2175 = vmatprep.subr.mxu1 %v499_v41 }
  0x7c   : > { %2149 = vmatpush3.msra.mxu0 %v3216_v57  ;;  %2176 = vmatpush3.msra.mxu1 %v499_v41  ;;  %v422_v41 = vand.u32 4294901760, %v421_v0  ;;  %v548_v0 = vand.u32 4294901760, %v547_v48 }
  0x7d   : > { %2150 = vmatprep.subr.mxu0 %v3239_v8  ;;  %2177 = vmatprep.subr.mxu1 %v506_v54 }
  0x7e   : > { %2151 = vmatpush3.msra.mxu0 %v3239_v8  ;;  %2178 = vmatpush3.msra.mxu1 %v506_v54  ;;  %v534_v54 = vand.u32 4294901760, %v533_v35 }
  0x7f   : > { %2152 = vmatprep.subr.mxu0 %v3254_v31  ;;  %2179 = vmatprep.subr.mxu1 %v513_v63 }
  0x80   : > { %2153 = vmatpush3.msra.mxu0 %v3254_v31  ;;  %2180 = vmatpush3.msra.mxu1 %v513_v63  ;;  %v541_v63 = vand.u32 4294901760, %v540_v55 }
  0x81   : > { %2154 = vmatprep.subr.mxu0 %v3266_v38  ;;  %2181 = vmatprep.subr.mxu1 %v520_v18 }
  0x82   : > { %2155 = vmatpush3.msra.mxu0 %v3266_v38  ;;  %2182 = vmatpush3.msra.mxu1 %v520_v18 }
  0x83   : > { %2156 = vmatprep.mubr.f32.mxu0 %v422_v41  ;;  %2183 = vmatprep.subr.mxu1 %v527_v44 }
  0x84   : > { %2194 = vmatprep.subr.mxu0 %v3121_v14  ;;  %2157 = vmatmul.mubr.f32.vlgmr.msra.gmra.mxu0 %v432_v50 }
  0x85   : > { %2184 = vmatpush3.msra.mxu1 %v527_v44  ;;  %2195 = vmatpush3.msra.mxu0 %v3121_v14  ;;  %v3961_v14 = vand.u32 4294901760, %v3248_v25 }
  0x86   : > { %2185 = vmatprep.subr.mxu1 %v534_v54  ;;  %2196 = vmatprep.subr.mxu0 %v3124_v15 }
  0x87   : > { %2186 = vmatpush3.msra.mxu1 %v534_v54  ;;  %2197 = vmatpush3.msra.mxu0 %v3124_v15  ;;  %v3962_v15 = vand.u32 4294901760, %v3257_v32 }
  0x88   : > { %2187 = vmatprep.subr.mxu1 %v541_v63  ;;  %2198 = vmatprep.subr.mxu0 %v3129_v17 }
  0x89   : > { %2188 = vmatpush3.msra.mxu1 %v541_v63  ;;  %2199 = vmatpush3.msra.mxu0 %v3129_v17 }
  0x8a   : > { %2189 = vmatprep.subr.mxu1 %v548_v0  ;;  %2200 = vmatprep.subr.mxu0 %v3133_v19 }
  0x8b   : > { %2190 = vmatpush3.msra.mxu1 %v548_v0  ;;  %2191 = vmatprep.mubr.f32.mxu1 %v3224_v61 }
  0x8c   : > { %2201 = vmatpush3.msra.mxu0 %v3133_v19  ;;  %2192 = vmatmul.mubr.f32.vlgmr.msra.gmra.mxu1 %v3227_v62 }
  0x8d   : > { %2202 = vmatprep.subr.mxu0 %v3136_v20  ;;  %2229 = vmatprep.subr.mxu1 %v3107_v3 }
  0x8e   : > { %2203 = vmatpush3.msra.mxu0 %v3136_v20  ;;  %2230 = vmatpush3.msra.mxu1 %v3107_v3 }
  0x8f   : > { %2204 = vmatprep.subr.mxu0 %v3160_v29  ;;  %2231 = vmatprep.subr.mxu1 %v3109_v4 }
  0x90   : > { %2205 = vmatpush3.msra.mxu0 %v3160_v29  ;;  %2232 = vmatpush3.msra.mxu1 %v3109_v4 }
  0x91   : > { %2206 = vmatprep.subr.mxu0 %v3170_v33  ;;  %2233 = vmatprep.subr.mxu1 %v3111_v5 }
  0x92   : > { %2207 = vmatpush3.msra.mxu0 %v3170_v33  ;;  %2234 = vmatpush3.msra.mxu1 %v3111_v5  ;;  %v1896_v33 = vld [vmem:[%s3920_s2] ss:$0 sm:$0xff] }
  0x93   : > { %2208 = vmatprep.subr.mxu0 %v3188_v43  ;;  %2235 = vmatprep.subr.mxu1 %v3113_v9 }
  0x94   : > { %2209 = vmatpush3.msra.mxu0 %v3188_v43  ;;  %2236 = vmatpush3.msra.mxu1 %v3113_v9 }
  0x95   : > { %2210 = vmatprep.subr.mxu0 %v3194_v46  ;;  %2237 = vmatprep.subr.mxu1 %v3115_v10 }
  0x96   : > { %2211 = vmatpush3.msra.mxu0 %v3194_v46  ;;  %2238 = vmatpush3.msra.mxu1 %v3115_v10 }
  0x97   : > { %2212 = vmatprep.subr.mxu0 %v3208_v53  ;;  %2239 = vmatprep.subr.mxu1 %v3117_v11 }
  0x98   : > { %2213 = vmatpush3.msra.mxu0 %v3208_v53  ;;  %2240 = vmatpush3.msra.mxu1 %v3117_v11 }
  0x99   : > { %2214 = vmatprep.subr.mxu0 %v3222_v60  ;;  %2241 = vmatprep.subr.mxu1 %v3126_v16 }
  0x9a   : > { %2215 = vmatpush3.msra.mxu0 %v3222_v60  ;;  %2242 = vmatpush3.msra.mxu1 %v3126_v16 }
  0x9b   : > { %2216 = vmatprep.subr.mxu0 %v3236_v6  ;;  %2243 = vmatprep.subr.mxu1 %v3148_v24 }
  0x9c   : > { %2217 = vmatpush3.msra.mxu0 %v3236_v6  ;;  %2244 = vmatpush3.msra.mxu1 %v3148_v24 }
  0x9d   : > { %2218 = vmatprep.subr.mxu0 %v3251_v30  ;;  %2245 = vmatprep.subr.mxu1 %v3154_v27 }
  0x9e   : > { %2219 = vmatpush3.msra.mxu0 %v3251_v30  ;;  %2246 = vmatpush3.msra.mxu1 %v3154_v27 }
  0x9f   : > { %2220 = vmatprep.subr.mxu0 %v3269_v40  ;;  %2247 = vmatprep.subr.mxu1 %v3173_v34 }
  0xa0   : > { %2221 = vmatpush3.msra.mxu0 %v3269_v40  ;;  %2248 = vmatpush3.msra.mxu1 %v3173_v34 }
  0xa1   : > { %2222 = vmatprep.subr.mxu0 %v3281_v51  ;;  %2249 = vmatprep.subr.mxu1 %v3191_v45 }
  0xa2   : > { %2223 = vmatpush3.msra.mxu0 %v3281_v51  ;;  %2250 = vmatpush3.msra.mxu1 %v3191_v45 }
  0xa3   : > { %2224 = vmatprep.subr.mxu0 %v3291_v59  ;;  %2251 = vmatprep.subr.mxu1 %v3197_v47 }
  0xa4   : > { %2225 = vmatpush3.msra.mxu0 %v3291_v59  ;;  %2226 = vmatprep.mubr.f32.mxu0 %v3248_v25 }
  0xa5   : > { %2252 = vmatpush3.msra.mxu1 %v3197_v47  ;;  %2227 = vmatmul.mubr.f32.vlgmr.msra.gmra.mxu0 %v3257_v32 }
  0xa6   : > { %2253 = vmatprep.subr.mxu1 %v3216_v57  ;;  %2264 = vmatprep.subr.mxu0 %v3140_v21 }
  0xa7   : > { %2254 = vmatpush3.msra.mxu1 %v3216_v57  ;;  %2265 = vmatpush3.msra.mxu0 %v3140_v21 }
  0xa8   : > { %2255 = vmatprep.subr.mxu1 %v3239_v8  ;;  %2266 = vmatprep.subr.mxu0 %v3143_v22 }
  0xa9   : > { %2256 = vmatpush3.msra.mxu1 %v3239_v8  ;;  %2267 = vmatpush3.msra.mxu0 %v3143_v22 }
  0xaa   : > { %2257 = vmatprep.subr.mxu1 %v3254_v31  ;;  %2268 = vmatprep.subr.mxu0 %v3146_v23 }
  0xab   : > { %2258 = vmatpush3.msra.mxu1 %v3254_v31  ;;  %2269 = vmatpush3.msra.mxu0 %v3146_v23 }
  0xac   : > { %2259 = vmatprep.subr.mxu1 %v3266_v38  ;;  %2270 = vmatprep.subr.mxu0 %v3152_v26 }
  0xad   : > { %2260 = vmatpush3.msra.mxu1 %v3266_v38  ;;  %2261 = vmatprep.mubr.f32.mxu1 %v3961_v14 }
  0xae   : > { %2271 = vmatpush3.msra.mxu0 %v3152_v26  ;;  %2262 = vmatmul.mubr.f32.vlgmr.msra.gmra.mxu1 %v3962_v15 }
  0xaf   : > { %2272 = vmatprep.subr.mxu0 %v3157_v28  ;;  %2299 = vmatprep.subr.mxu1 %v3107_v3 }
  0xb0   : > { %2273 = vmatpush3.msra.mxu0 %v3157_v28  ;;  %2300 = vmatpush3.msra.mxu1 %v3107_v3 }
  0xb1   : > { %2274 = vmatprep.subr.mxu0 %v3179_v39  ;;  %2301 = vmatprep.subr.mxu1 %v3109_v4 }
  0xb2   : > { %2275 = vmatpush3.msra.mxu0 %v3179_v39  ;;  %2302 = vmatpush3.msra.mxu1 %v3109_v4 }
  0xb3   : > { %2276 = vmatprep.subr.mxu0 %v3185_v42  ;;  %2303 = vmatprep.subr.mxu1 %v3111_v5 }
  0xb4   : > { %2277 = vmatpush3.msra.mxu0 %v3185_v42  ;;  %2304 = vmatpush3.msra.mxu1 %v3111_v5  ;;  %v1897_v42 = vld [vmem:[%s3921_s3] ss:$0 sm:$0xff] }
  0xb5   : > { %2278 = vmatprep.subr.mxu0 %v3205_v52  ;;  %2305 = vmatprep.subr.mxu1 %v3113_v9 }
  0xb6   : > { %2279 = vmatpush3.msra.mxu0 %v3205_v52  ;;  %2306 = vmatpush3.msra.mxu1 %v3113_v9 }
  0xb7   : > { %2280 = vmatprep.subr.mxu0 %v3219_v58  ;;  %2307 = vmatprep.subr.mxu1 %v3115_v10 }
  0xb8   : > { %2281 = vmatpush3.msra.mxu0 %v3219_v58  ;;  %2308 = vmatpush3.msra.mxu1 %v3115_v10 }
  0xb9   : > { %2282 = vmatprep.subr.mxu0 %v3233_v1  ;;  %2309 = vmatprep.subr.mxu1 %v3117_v11 }
  0xba   : > { %2283 = vmatpush3.msra.mxu0 %v3233_v1  ;;  %2310 = vmatpush3.msra.mxu1 %v3117_v11 }
  0xbb   : > { %2284 = vmatprep.subr.mxu0 %v3245_v13  ;;  %2311 = vmatprep.subr.mxu1 %v3126_v16 }
  0xbc   : > { %2285 = vmatpush3.msra.mxu0 %v3245_v13  ;;  %2312 = vmatpush3.msra.mxu1 %v3126_v16 }
  0xbd   : > { %2286 = vmatprep.subr.mxu0 %v3263_v37  ;;  %2313 = vmatprep.subr.mxu1 %v3148_v24 }
  0xbe   : > { %2287 = vmatpush3.msra.mxu0 %v3263_v37  ;;  %2314 = vmatpush3.msra.mxu1 %v3148_v24 }
  0xbf   : > { %2288 = vmatprep.subr.mxu0 %v3276_v49  ;;  %2315 = vmatprep.subr.mxu1 %v3154_v27 }
  0xc0   : > { %2289 = vmatpush3.msra.mxu0 %v3276_v49  ;;  %2316 = vmatpush3.msra.mxu1 %v3154_v27 }
  0xc1   : > { %2290 = vmatprep.subr.mxu0 %v3288_v56  ;;  %2317 = vmatprep.subr.mxu1 %v3173_v34 }
  0xc2   : > { %2291 = vmatpush3.msra.mxu0 %v3288_v56  ;;  %2318 = vmatpush3.msra.mxu1 %v3173_v34 }
  0xc3   : > { %2292 = vmatprep.subr.mxu0 %v3304_v12  ;;  %2319 = vmatprep.subr.mxu1 %v3191_v45 }
  0xc4   : > { %2293 = vmatpush3.msra.mxu0 %v3304_v12  ;;  %2320 = vmatpush3.msra.mxu1 %v3191_v45 }
  0xc5   : > { %2294 = vmatprep.subr.mxu0 %v3311_v36  ;;  %2321 = vmatprep.subr.mxu1 %v3197_v47 }
  0xc6   : > { %2295 = vmatpush3.msra.mxu0 %v3311_v36  ;;  %2296 = vmatprep.mubr.f32.mxu0 %v3224_v61 }
  0xc7   : > { %2322 = vmatpush3.msra.mxu1 %v3197_v47  ;;  %2297 = vmatmul.mubr.f32.vlgmr.msra.gmra.mxu0 %v3227_v62 }
  0xc8   : > { %2323 = vmatprep.subr.mxu1 %v3216_v57  ;;  %2331 = vmatprep.mubr.f32.mxu1 %v3224_v61 }
  0xc9   : > { %2324 = vmatpush3.msra.mxu1 %v3216_v57 }
  0xca   : > { %2325 = vmatprep.subr.mxu1 %v3239_v8 }
  0xcb   : > { %2326 = vmatpush3.msra.mxu1 %v3239_v8 }
  0xcc   : > { %2327 = vmatprep.subr.mxu1 %v3254_v31 }
  0xcd   : > { %2328 = vmatpush3.msra.mxu1 %v3254_v31 }
  0xce   : > { %2329 = vmatprep.subr.mxu1 %v3266_v38 }
  0xcf   : > { %2330 = vmatpush3.msra.mxu1 %v3266_v38 }
  0xd0   : > { %2332 = vmatmul.mubr.f32.vlgmr.msra.gmra.mxu1 %v3227_v62 }
 0x144   : > { %v2158_v3 = vpop.f32.mrf.mxu0 }
 0x146   : > { %v424_v4 = vpop.f32.mrf.mxu0 }
 0x14c   : > { %v2193_v5 = vpop.f32.mrf.mxu1 }
 0x14d   : > { %v592_v17 = vadd.f32 %v2193_v5, %v2158_v3 }
 0x14e   : > { %v585_v10 = vpop.f32.mrf.mxu1 }
 0x14f   : > { %v586_v20 = vadd.f32 %v585_v10, %v424_v4 }
 0x165   : > { %v2228_v9 = vpop.f32.mrf.mxu0 }
 0x166   : > { %v703_v21 = vadd.f32 %v2228_v9, %v592_v17 }
 0x167   : > { %v695_v11 = vpop.f32.mrf.mxu0 }
 0x168   : > { %v696_v23 = vadd.f32 %v695_v11, %v586_v20 }
 0x16e   : > { %v2263_v16 = vpop.f32.mrf.mxu1 }
 0x16f   : > { %v800_v24 = vadd.f32 %v2263_v16, %v703_v21 }
 0x170   : > { %v791_v22 = vpop.f32.mrf.mxu1 }
 0x171   : > { %v792_v27 = vadd.f32 %v791_v22, %v696_v23 }
 0x187   : > { %v2298_v19 = vpop.f32.mrf.mxu0 }
 0x188   : > { %v925_v28 = vadd.f32 %v2298_v19, %v800_v24 }
 0x189   : > { %v918_v26 = vpop.f32.mrf.mxu0 }
 0x18a   : > { %v919_v34 = vadd.f32 %v918_v26, %v792_v27 }
 0x190   : > { %v2333_v29 = vpop.f32.mrf.mxu1 }
 0x191   : > { %v1018_v39 = vadd.f32 %v2333_v29, %v925_v28 }
 0x192   : > { %v1011_v43 = vpop.f32.mrf.mxu1 }
 0x193   : > { %v1029_v45 = vmul.f32 %v1896_v33, %v1018_v39  ;;  %v1012_v46 = vadd.f32 %v1011_v43, %v919_v34 }
 0x195   : > { %v1038_v47 = vadd.f32 %v1897_v42, %v1029_v45  ;;  %v1028_v52 = vmul.f32 %v1896_v33, %v1012_v46 }
 0x197   : > { %v1040_v53 = vmax.f32 %v1038_v47, 0.0  ;;  %v1037_v57 = vadd.f32 %v1897_v42, %v1028_v52 }
 0x199   : > { %1042 = vst [vmem:[#allocation2 + $0x8] sm:$0xff] %v1040_v53  ;;  %v1039_v58 = vmax.f32 %v1037_v57, 0.0 }
 0x19b   : > { %1041 = vst [vmem:[#allocation2] sm:$0xff] %v1039_v58 }
 0x19c PF: > { %s1898_s8 = sshll.u32 %s2860_s27, 7  ;;  %s3965_s4 = sld [smem:[#allocation14_spill]] }
 0x19d   : > { %s3473_s1 = scalar_lea.vmem [#allocation8], %s1898_s8  ;;  %s3966_s13 = sld [smem:[#allocation21_spill]] }
 0x19e   : > { %v1060_v62 = vld [vmem:[%s3473_s1 + $0x78] sm:$0xff]  ;;  %v1059_v1 = vld [vmem:[%s3473_s1 + $0x70] sm:$0xff]  ;;  %v1058_v6 = vld [vmem:[%s3473_s1 + $0x68] sm:$0xff]  ;;  %s1773_s21 = sshll.u32 %s3104_s28, 4  ;;  %s3968_s15 = sld [smem:[#allocation22_spill]]  ;;  %s3852_s21 = int_to_ptr.vmem [resolvable:$true] %s1773_s21 }
 0x19f   : > { %v3478_v8 = vand.u32 4294901760, %v1060_v62  ;;  %v3480_v13 = vand.u32 4294901760, %v1059_v1  ;;  %v3482_v25 = vand.u32 4294901760, %v1058_v6  ;;  %v1057_v30 = vld [vmem:[%s3473_s1 + $0x60] sm:$0xff]  ;;  %v1056_v31 = vld [vmem:[%s3473_s1 + $0x58] sm:$0xff]  ;;  %v1055_v32 = vld [vmem:[%s3473_s1 + $0x50] sm:$0xff] }
 0x1a0   : > { %v3488_v37 = vand.u32 4294901760, %v1057_v30  ;;  %v3490_v38 = vand.u32 4294901760, %v1056_v31  ;;  %v3492_v40 = vand.u32 4294901760, %v1055_v32  ;;  %v1054_v48 = vld [vmem:[%s3473_s1 + $0x48] sm:$0xff]  ;;  %v1053_v49 = vld [vmem:[%s3473_s1 + $0x40] sm:$0xff]  ;;  %v1052_v2 = vld [vmem:[%s3473_s1 + $0x38] sm:$0xff] }
 0x1a1   : > { %2334 = vmatprep.subr.mxu0 %v3478_v8  ;;  %v3498_v50 = vsub.f32 %v1060_v62, %v3478_v8  ;;  %v3501_v51 = vsub.f32 %v1059_v1, %v3480_v13  ;;  %v3503_v56 = vand.u32 4294901760, %v1054_v48  ;;  %v3506_v59 = vsub.f32 %v1058_v6, %v3482_v25  ;;  %v1051_v44 = vld [vmem:[%s3473_s1 + $0x30] sm:$0xff]  ;;  %v1050_v9 = vld [vmem:[%s3473_s1 + $0x28] sm:$0xff]  ;;  %v1049_v19 = vld [vmem:[%s3473_s1 + $0x20] sm:$0xff]  ;;  %s2752_s8 = scalar_lea.vmem %s3852_s21, 256 }
 0x1a2   : > { %v3468_v60 = vld [vmem:[#allocation2] sm:$0xff]  ;;  %2335 = vmatpush3.msra.mxu0 %v3478_v8  ;;  %v3511_v7 = vsub.f32 %v1057_v30, %v3488_v37  ;;  %v3514_v12 = vsub.f32 %v1056_v31, %v3490_v38  ;;  %v3526_v41 = vand.u32 4294901760, %v1053_v49  ;;  %v3533_v54 = vand.u32 4294901760, %v1052_v2  ;;  %v1048_v28 = vld [vmem:[%s3473_s1 + $0x18] sm:$0xff]  ;;  %v1064_v42 = vld [vmem:[#allocation2 + $0x8] sm:$0xff]  ;;  %s1907_s14 = sshll.u32 %s3965_s4, 2  ;;  %p2753_p1 = scmp.ne.s32.totalorder %s3852_s21, %s2752_s8 }
 0x1a3   : > { %v3471_v61 = vand.u32 4294901760, %v3468_v60  ;;  %2336 = vmatprep.subr.mxu0 %v3480_v13  ;;  %v3518_v18 = vand.u32 4294901760, %v3498_v50  ;;  %v3521_v35 = vand.u32 4294901760, %v3501_v51  ;;  %v3524_v36 = vand.u32 4294901760, %v3506_v59  ;;  %v1047_v52 = vld [vmem:[%s3473_s1 + $0x10] sm:$0xff]  ;;  %v1046_v6 = vld [vmem:[%s3473_s1 + $0x8] sm:$0xff]  ;;  %s1061_s18 = scalar_lea.vmem %s3966_s13, %s2860_s27  ;;  %s1770_s16 = sadd.s32 %s2860_s27, %s1907_s14 }
 0x1a4   : > { %2337 = vmatpush3.msra.mxu0 %v3480_v13  ;;  %v3531_v55 = vand.u32 4294901760, %v3511_v7  ;;  %v3536_v63 = vand.u32 4294901760, %v3514_v12  ;;  %v3539_v0 = vsub.f32 %v1055_v32, %v3492_v40  ;;  %v3549_v4 = vsub.f32 %v1054_v48, %v3503_v56  ;;  %s1903_s20 = sshll.u32 %s1770_s16, 7  ;;  %s3858_s27 = scalar_lea.sflag [#allocation5], %s310_s5 }
 0x1a5   : > { %2401 = vmatprep.mubr.f32.mxu1 %v3471_v61  ;;  %2338 = vmatprep.subr.mxu0 %v3482_v25  ;;  %v1176_v14 = vsub.f32 %v3498_v50, %v3518_v18  ;;  %v1183_v15 = vsub.f32 %v3501_v51, %v3521_v35  ;;  %v1190_v3 = vsub.f32 %v3506_v59, %v3524_v36  ;;  %v3552_v5 = vand.u32 4294901760, %v1051_v44  ;;  %s3850_s24 = scalar_lea.hbm %s3968_s15, %s1903_s20  ;;  %p2754_p3 = pnand %p2753_p1, %p2993_p7 }
 0x1a6   : > { %2339 = vmatpush3.msra.mxu0 %v3482_v25  ;;  %v1197_v16 = vsub.f32 %v3511_v7, %v3531_v55  ;;  %v3559_v17 = vand.u32 4294901760, %v3539_v0  ;;  %v1204_v20 = vsub.f32 %v3514_v12, %v3536_v63  ;;  %v3566_v21 = vsub.f32 %v1053_v49, %v3526_v41 }
 0x1a7   : > { %2340 = vmatprep.subr.mxu0 %v3488_v37  ;;  %v1177_v10 = vand.u32 4294901760, %v1176_v14  ;;  %v1184_v11 = vand.u32 4294901760, %v1183_v15  ;;  %v1191_v22 = vand.u32 4294901760, %v1190_v3  ;;  %v3569_v23 = vand.u32 4294901760, %v1050_v9  ;;  %p2755_p11 = pneg %p2754_p3 }
 0x1a8   : > { %2341 = vmatpush3.msra.mxu0 %v3488_v37  ;;  %v3572_v24 = vand.u32 4294901760, %v3549_v4  ;;  %v3575_v26 = vsub.f32 %v1052_v2, %v3533_v54  ;;  %v3578_v27 = vand.u32 4294901760, %v1049_v19  ;;  %v1198_v29 = vand.u32 4294901760, %v1197_v16 }
 0x1a9   : > { %2342 = vmatprep.subr.mxu0 %v3490_v38  ;;  %2369 = vmatprep.subr.mxu1 %v1177_v10  ;;  %v1211_v33 = vsub.f32 %v3539_v0, %v3559_v17  ;;  %v3585_v34 = vand.u32 4294901760, %v3566_v21  ;;  %v3588_v39 = vsub.f32 %v1051_v44, %v3552_v5  ;;  %v1205_v43 = vand.u32 4294901760, %v1204_v20  ;;  %v1045_v44 = vld [vmem:[%s3473_s1] sm:$0xff]  ;;  %s2883_s1 = smov [#allocation9]  }
 0x1aa   : > { %2343 = vmatpush3.msra.mxu0 %v3490_v38  ;;  %2370 = vmatpush3.msra.mxu1 %v1177_v10  ;;  %v1218_v45 = vsub.f32 %v3549_v4, %v3572_v24  ;;  %v3594_v46 = vand.u32 4294901760, %v1048_v28  ;;  %v3597_v47 = vand.u32 4294901760, %v3575_v26  ;;  %v3601_v53 = vsub.f32 %v1050_v9, %v3569_v23  ;;  %s2756_s4 = sshll.u32 %s2883_s1, 4  ;;  %s2757_s4 = int_to_ptr.vmem [resolvable:$false] %s2756_s4 }
 0x1ab   : > { %2344 = vmatprep.subr.mxu0 %v3492_v40  ;;  %2371 = vmatprep.subr.mxu1 %v1184_v11  ;;  %v3604_v57 = vand.u32 4294901760, %v1064_v42  ;;  %v1212_v58 = vand.u32 4294901760, %v1211_v33  ;;  %v1225_v62 = vsub.f32 %v3566_v21, %v3585_v34  ;;  %v3610_v1 = vand.u32 4294901760, %v3588_v39  ;;  %s2758_s9 = scalar_lea.vmem %s2757_s4, 512  ;;  %p2759_p5 = scmp.lt.s32.totalorder %s3852_s21, %s2757_s4 }
 0x1ac   : > { %2345 = vmatpush3.msra.mxu0 %v3492_v40  ;;  %2372 = vmatpush3.msra.mxu1 %v1184_v11  ;;  %v3614_v30 = vsub.f32 %v1049_v19, %v3578_v27  ;;  %v3617_v31 = vand.u32 4294901760, %v1047_v52  ;;  %v3621_v32 = vsub.f32 %v3468_v60, %v3471_v61  ;;  %v1219_v48 = vand.u32 4294901760, %v1218_v45  ;;  %p2760_p12 = scmp.lt.s32.totalorder %s2758_s9, %s2752_s8 }
 0x1ad   : > { %2346 = vmatprep.subr.mxu0 %v3503_v56  ;;  %2373 = vmatprep.subr.mxu1 %v1191_v22  ;;  %v1232_v49 = vsub.f32 %v3575_v26, %v3597_v47  ;;  %v3627_v2 = vand.u32 4294901760, %v3601_v53  ;;  %v3631_v14 = vsub.f32 %v1048_v28, %v3594_v46  ;;  %v3634_v15 = vand.u32 4294901760, %v1046_v6 }
 0x1ae   : > { %2347 = vmatpush3.msra.mxu0 %v3503_v56  ;;  %2374 = vmatpush3.msra.mxu1 %v1191_v22  ;;  %v3637_v60 = vsub.f32 %v1064_v42, %v3604_v57  ;;  %v1226_v3 = vand.u32 4294901760, %v1225_v62  ;;  %v1239_v9 = vsub.f32 %v3588_v39, %v3610_v1  ;;  %v3643_v10 = vand.u32 4294901760, %v3614_v30  ;;  %p2761_p0 = por %p2760_p12, %p2759_p5 }
 0x1af   : > { %2348 = vmatprep.subr.mxu0 %v3526_v41  ;;  %2375 = vmatprep.subr.mxu1 %v1198_v29  ;;  %v3646_v11 = vand.u32 4294901760, %v1045_v44  ;;  %v3649_v16 = vsub.f32 %v1047_v52, %v3617_v31  ;;  %v1233_v19 = vand.u32 4294901760, %v1232_v49  ;;  %v1246_v20 = vsub.f32 %v3601_v53, %v3627_v2 }
 0x1b0   : > { %2349 = vmatpush3.msra.mxu0 %v3526_v41  ;;  %2376 = vmatpush3.msra.mxu1 %v1198_v29  ;;  %v3937_v22 = vand.u32 4294901760, %v3621_v32  ;;  %v3656_v28 = vand.u32 4294901760, %v3631_v14  ;;  %v3936_v29 = vand.u32 4294901760, %v3637_v60  ;;  %v3661_v33 = vsub.f32 %v1046_v6, %v3634_v15  ;;  %p2762_p2 = pnand %p2761_p0, %p2755_p11 }
 0x1b1   : > { %2350 = vmatprep.subr.mxu0 %v3533_v54  ;;  %2377 = vmatprep.subr.mxu1 %v1205_v43  ;;  %v1240_v42 = vand.u32 4294901760, %v1239_v9  ;;  %v3668_v45 = vand.u32 4294901760, %v3649_v16  ;;  %v3671_v52 = vsub.f32 %v1045_v44, %v3646_v11 }
 0x1b2   : > { %2351 = vmatpush3.msra.mxu0 %v3533_v54  ;;  %2378 = vmatpush3.msra.mxu1 %v1205_v43  ;;  %v1253_v43 = vsub.f32 %v3614_v30, %v3643_v10  ;;  %v1155_v62 = vsub.f32 %v3621_v32, %v3937_v22  ;;  %v1260_v6 = vsub.f32 %v3631_v14, %v3656_v28  ;;  %v3684_v49 = vand.u32 4294901760, %v3661_v33 }
 0x1b3   : > { %2352 = vmatprep.subr.mxu0 %v3552_v5  ;;  %2379 = vmatprep.subr.mxu1 %v1212_v58  ;;  %v3691_v9 = vand.u32 4294901760, %v3671_v52 }
 0x1b4   : > { %2353 = vmatpush3.msra.mxu0 %v3552_v5  ;;  %2380 = vmatpush3.msra.mxu1 %v1212_v58  ;;  %v1247_v58 = vand.u32 4294901760, %v1246_v20  ;;  %v1254_v44 = vand.u32 4294901760, %v1253_v43  ;;  %v1261_v20 = vand.u32 4294901760, %v1260_v6  ;;  %v1274_v43 = vsub.f32 %v3661_v33, %v3684_v49 }
 0x1b5   : > { %2354 = vmatprep.subr.mxu0 %v3569_v23  ;;  %2381 = vmatprep.subr.mxu1 %v1219_v48  ;;  %v1281_v22 = vsub.f32 %v3671_v52, %v3691_v9 }
 0x1b6   : > { %2355 = vmatpush3.msra.mxu0 %v3569_v23  ;;  %2382 = vmatpush3.msra.mxu1 %v1219_v48  ;;  %v1165_v48 = vsub.f32 %v3637_v60, %v3936_v29 }
 0x1b7   : > { %2356 = vmatprep.subr.mxu0 %v3578_v27  ;;  %2383 = vmatprep.subr.mxu1 %v1226_v3 }
 0x1b8   : > { %2357 = vmatpush3.msra.mxu0 %v3578_v27  ;;  %2384 = vmatpush3.msra.mxu1 %v1226_v3  ;;  %v1267_v3 = vsub.f32 %v3649_v16, %v3668_v45  ;;  %v1166_v29 = vand.u32 4294901760, %v1165_v48 }
 0x1b9   : > { %2358 = vmatprep.subr.mxu0 %v3594_v46  ;;  %2385 = vmatprep.subr.mxu1 %v1233_v19 }
 0x1ba   : > { %2359 = vmatpush3.msra.mxu0 %v3594_v46  ;;  %2386 = vmatpush3.msra.mxu1 %v1233_v19  ;;  %v1156_v19 = vand.u32 4294901760, %v1155_v62  ;;  %v1282_v62 = vand.u32 4294901760, %v1281_v22 }
 0x1bb   : > { %2360 = vmatprep.subr.mxu0 %v3617_v31  ;;  %2387 = vmatprep.subr.mxu1 %v1240_v42 }
 0x1bc   : > { %2361 = vmatpush3.msra.mxu0 %v3617_v31  ;;  %2388 = vmatpush3.msra.mxu1 %v1240_v42  ;;  %v1268_v42 = vand.u32 4294901760, %v1267_v3 }
 0x1bd   : > { %2362 = vmatprep.subr.mxu0 %v3634_v15  ;;  %2389 = vmatprep.subr.mxu1 %v1247_v58 }
 0x1be   : > { %2363 = vmatpush3.msra.mxu0 %v3634_v15  ;;  %2390 = vmatpush3.msra.mxu1 %v1247_v58  ;;  %v1275_v58 = vand.u32 4294901760, %v1274_v43 }
 0x1bf   : > { %2364 = vmatprep.subr.mxu0 %v3646_v11  ;;  %2391 = vmatprep.subr.mxu1 %v1254_v44 }
 0x1c0   : > { %2365 = vmatpush3.msra.mxu0 %v3646_v11  ;;  %2392 = vmatpush3.msra.mxu1 %v1254_v44 }
 0x1c1   : > { %2366 = vmatprep.mubr.f32.mxu0 %v1156_v19  ;;  %2393 = vmatprep.subr.mxu1 %v1261_v20 }
 0x1c2   : > { %2404 = vmatprep.subr.mxu0 %v3498_v50  ;;  %2367 = vmatmul.mubr.f32.vlgmr.msra.gmra.mxu0 %v1166_v29 }
 0x1c3   : > { %2394 = vmatpush3.msra.mxu1 %v1261_v20  ;;  %2405 = vmatpush3.msra.mxu0 %v3498_v50  ;;  %v3963_v50 = vand.u32 4294901760, %v3621_v32 }
 0x1c4   : > { %2395 = vmatprep.subr.mxu1 %v1268_v42  ;;  %2406 = vmatprep.subr.mxu0 %v3501_v51 }
 0x1c5   : > { %2396 = vmatpush3.msra.mxu1 %v1268_v42  ;;  %2407 = vmatpush3.msra.mxu0 %v3501_v51  ;;  %v3964_v51 = vand.u32 4294901760, %v3637_v60 }
 0x1c6   : > { %2397 = vmatprep.subr.mxu1 %v1275_v58  ;;  %2408 = vmatprep.subr.mxu0 %v3506_v59 }
 0x1c7   : > { %2398 = vmatpush3.msra.mxu1 %v1275_v58  ;;  %2409 = vmatpush3.msra.mxu0 %v3506_v59 }
 0x1c8   : > { %2399 = vmatprep.subr.mxu1 %v1282_v62  ;;  %2410 = vmatprep.subr.mxu0 %v3511_v7 }
 0x1c9   : > { %2400 = vmatpush3.msra.mxu1 %v1282_v62  ;;  %2411 = vmatpush3.msra.mxu0 %v3511_v7 }
 0x1ca   : > { %2402 = vmatmul.mubr.f32.vlgmr.msra.gmra.mxu1 %v3604_v57  ;;  %2412 = vmatprep.subr.mxu0 %v3514_v12 }
 0x1cb   : > { %2439 = vmatprep.subr.mxu1 %v3478_v8  ;;  %2413 = vmatpush3.msra.mxu0 %v3514_v12 }
 0x1cc   : > { %2440 = vmatpush3.msra.mxu1 %v3478_v8  ;;  %2414 = vmatprep.subr.mxu0 %v3539_v0 }
 0x1cd   : > { %2441 = vmatprep.subr.mxu1 %v3480_v13  ;;  %2415 = vmatpush3.msra.mxu0 %v3539_v0 }
 0x1ce   : > { %2442 = vmatpush3.msra.mxu1 %v3480_v13  ;;  %2416 = vmatprep.subr.mxu0 %v3549_v4 }
 0x1cf   : > { %2443 = vmatprep.subr.mxu1 %v3482_v25  ;;  %2417 = vmatpush3.msra.mxu0 %v3549_v4 }
 0x1d0   : > { %2444 = vmatpush3.msra.mxu1 %v3482_v25  ;;  %2418 = vmatprep.subr.mxu0 %v3566_v21 }
 0x1d1   : > { %2445 = vmatprep.subr.mxu1 %v3488_v37  ;;  %2419 = vmatpush3.msra.mxu0 %v3566_v21 }
 0x1d2   : > { %2446 = vmatpush3.msra.mxu1 %v3488_v37  ;;  %2420 = vmatprep.subr.mxu0 %v3575_v26 }
 0x1d3   : > { %2447 = vmatprep.subr.mxu1 %v3490_v38  ;;  %2421 = vmatpush3.msra.mxu0 %v3575_v26 }
 0x1d4   : > { %2448 = vmatpush3.msra.mxu1 %v3490_v38  ;;  %2422 = vmatprep.subr.mxu0 %v3588_v39 }
 0x1d5   : > { %2449 = vmatprep.subr.mxu1 %v3492_v40  ;;  %2423 = vmatpush3.msra.mxu0 %v3588_v39 }
 0x1d6   : > { %2450 = vmatpush3.msra.mxu1 %v3492_v40  ;;  %2424 = vmatprep.subr.mxu0 %v3601_v53 }
 0x1d7   : > { %2451 = vmatprep.subr.mxu1 %v3503_v56  ;;  %2425 = vmatpush3.msra.mxu0 %v3601_v53 }
 0x1d8   : > { %2452 = vmatpush3.msra.mxu1 %v3503_v56  ;;  %2426 = vmatprep.subr.mxu0 %v3614_v30 }
 0x1d9   : > { %2453 = vmatprep.subr.mxu1 %v3526_v41  ;;  %2427 = vmatpush3.msra.mxu0 %v3614_v30 }
 0x1da   : > { %2454 = vmatpush3.msra.mxu1 %v3526_v41  ;;  %2428 = vmatprep.subr.mxu0 %v3631_v14 }
 0x1db   : > { %2455 = vmatprep.subr.mxu1 %v3533_v54  ;;  %2429 = vmatpush3.msra.mxu0 %v3631_v14 }
 0x1dc   : > { %2456 = vmatpush3.msra.mxu1 %v3533_v54  ;;  %2430 = vmatprep.subr.mxu0 %v3649_v16 }
 0x1dd   : > { %2457 = vmatprep.subr.mxu1 %v3552_v5  ;;  %2431 = vmatpush3.msra.mxu0 %v3649_v16 }
 0x1de   : > { %2458 = vmatpush3.msra.mxu1 %v3552_v5  ;;  %2432 = vmatprep.subr.mxu0 %v3661_v33 }
 0x1df   : > { %2459 = vmatprep.subr.mxu1 %v3569_v23  ;;  %2433 = vmatpush3.msra.mxu0 %v3661_v33 }
 0x1e0   : > { %2460 = vmatpush3.msra.mxu1 %v3569_v23  ;;  %2434 = vmatprep.subr.mxu0 %v3671_v52 }
 0x1e1   : > { %2461 = vmatprep.subr.mxu1 %v3578_v27  ;;  %2435 = vmatpush3.msra.mxu0 %v3671_v52 }
 0x1e2   : > { %2436 = vmatprep.mubr.f32.mxu0 %v3621_v32  ;;  %2462 = vmatpush3.msra.mxu1 %v3578_v27 }
 0x1e3   : > { %2437 = vmatmul.mubr.f32.vlgmr.msra.gmra.mxu0 %v3637_v60  ;;  %2463 = vmatprep.subr.mxu1 %v3594_v46 }
 0x1e4   : > { %2474 = vmatprep.subr.mxu0 %v3518_v18  ;;  %2464 = vmatpush3.msra.mxu1 %v3594_v46 }
 0x1e5   : > { %2475 = vmatpush3.msra.mxu0 %v3518_v18  ;;  %2465 = vmatprep.subr.mxu1 %v3617_v31 }
 0x1e6   : > { %2476 = vmatprep.subr.mxu0 %v3521_v35  ;;  %2466 = vmatpush3.msra.mxu1 %v3617_v31 }
 0x1e7   : > { %2477 = vmatpush3.msra.mxu0 %v3521_v35  ;;  %2467 = vmatprep.subr.mxu1 %v3634_v15 }
 0x1e8   : > { %2478 = vmatprep.subr.mxu0 %v3524_v36  ;;  %2468 = vmatpush3.msra.mxu1 %v3634_v15 }
 0x1e9   : > { %2479 = vmatpush3.msra.mxu0 %v3524_v36  ;;  %2469 = vmatprep.subr.mxu1 %v3646_v11 }
 0x1ea   : > { %2480 = vmatprep.subr.mxu0 %v3531_v55  ;;  %2470 = vmatpush3.msra.mxu1 %v3646_v11 }
 0x1eb   : > { %2471 = vmatprep.mubr.f32.mxu1 %v3963_v50  ;;  %2481 = vmatpush3.msra.mxu0 %v3531_v55 }
 0x1ec   : > { %2472 = vmatmul.mubr.f32.vlgmr.msra.gmra.mxu1 %v3964_v51  ;;  %2482 = vmatprep.subr.mxu0 %v3536_v63 }
 0x1ed   : > { %2509 = vmatprep.subr.mxu1 %v3478_v8  ;;  %2483 = vmatpush3.msra.mxu0 %v3536_v63 }
 0x1ee   : > { %2510 = vmatpush3.msra.mxu1 %v3478_v8  ;;  %2484 = vmatprep.subr.mxu0 %v3559_v17 }
 0x1ef   : > { %2511 = vmatprep.subr.mxu1 %v3480_v13  ;;  %2485 = vmatpush3.msra.mxu0 %v3559_v17 }
 0x1f0   : > { %2512 = vmatpush3.msra.mxu1 %v3480_v13  ;;  %2486 = vmatprep.subr.mxu0 %v3572_v24 }
 0x1f1   : > { %2513 = vmatprep.subr.mxu1 %v3482_v25  ;;  %2487 = vmatpush3.msra.mxu0 %v3572_v24 }
 0x1f2   : > { %2514 = vmatpush3.msra.mxu1 %v3482_v25  ;;  %2488 = vmatprep.subr.mxu0 %v3585_v34 }
 0x1f3   : > { %2515 = vmatprep.subr.mxu1 %v3488_v37  ;;  %2489 = vmatpush3.msra.mxu0 %v3585_v34 }
 0x1f4   : > { %2516 = vmatpush3.msra.mxu1 %v3488_v37  ;;  %2490 = vmatprep.subr.mxu0 %v3597_v47 }
 0x1f5   : > { %2517 = vmatprep.subr.mxu1 %v3490_v38  ;;  %2491 = vmatpush3.msra.mxu0 %v3597_v47 }
 0x1f6   : > { %2518 = vmatpush3.msra.mxu1 %v3490_v38  ;;  %2492 = vmatprep.subr.mxu0 %v3610_v1 }
 0x1f7   : > { %2519 = vmatprep.subr.mxu1 %v3492_v40  ;;  %2493 = vmatpush3.msra.mxu0 %v3610_v1 }
 0x1f8   : > { %2520 = vmatpush3.msra.mxu1 %v3492_v40  ;;  %2494 = vmatprep.subr.mxu0 %v3627_v2 }
 0x1f9   : > { %2521 = vmatprep.subr.mxu1 %v3503_v56  ;;  %2495 = vmatpush3.msra.mxu0 %v3627_v2 }
 0x1fa   : > { %2522 = vmatpush3.msra.mxu1 %v3503_v56  ;;  %2496 = vmatprep.subr.mxu0 %v3643_v10 }
 0x1fb   : > { %2523 = vmatprep.subr.mxu1 %v3526_v41  ;;  %2497 = vmatpush3.msra.mxu0 %v3643_v10 }
 0x1fc   : > { %2524 = vmatpush3.msra.mxu1 %v3526_v41  ;;  %2498 = vmatprep.subr.mxu0 %v3656_v28 }
 0x1fd   : > { %2525 = vmatprep.subr.mxu1 %v3533_v54  ;;  %2499 = vmatpush3.msra.mxu0 %v3656_v28 }
 0x1fe   : > { %2526 = vmatpush3.msra.mxu1 %v3533_v54  ;;  %2500 = vmatprep.subr.mxu0 %v3668_v45 }
 0x1ff   : > { %2527 = vmatprep.subr.mxu1 %v3552_v5  ;;  %2501 = vmatpush3.msra.mxu0 %v3668_v45 }
 0x200   : > { %2528 = vmatpush3.msra.mxu1 %v3552_v5  ;;  %2502 = vmatprep.subr.mxu0 %v3684_v49 }
 0x201   : > { %2529 = vmatprep.subr.mxu1 %v3569_v23  ;;  %2503 = vmatpush3.msra.mxu0 %v3684_v49 }
 0x202   : > { %2530 = vmatpush3.msra.mxu1 %v3569_v23  ;;  %2504 = vmatprep.subr.mxu0 %v3691_v9 }
 0x203   : > { %2531 = vmatprep.subr.mxu1 %v3578_v27  ;;  %2505 = vmatpush3.msra.mxu0 %v3691_v9 }
 0x204   : > { %2506 = vmatprep.mubr.f32.mxu0 %v3471_v61  ;;  %2532 = vmatpush3.msra.mxu1 %v3578_v27 }
 0x205   : > { %2507 = vmatmul.mubr.f32.vlgmr.msra.gmra.mxu0 %v3604_v57  ;;  %2533 = vmatprep.subr.mxu1 %v3594_v46 }
 0x206   : > { %2534 = vmatpush3.msra.mxu1 %v3594_v46  ;;  %2541 = vmatprep.mubr.f32.mxu1 %v3471_v61  ;;  %v1899_v61 = vld [vmem:[%s1061_s18] ss:$0 sm:$0xff] }
 0x207   : > { %2535 = vmatprep.subr.mxu1 %v3617_v31 }
 0x208   : > { %2536 = vmatpush3.msra.mxu1 %v3617_v31 }
 0x209   : > { %2537 = vmatprep.subr.mxu1 %v3634_v15 }
 0x20a   : > { %2538 = vmatpush3.msra.mxu1 %v3634_v15 }
 0x20b   : > { %2539 = vmatprep.subr.mxu1 %v3646_v11 }
 0x20c   : > { %2540 = vmatpush3.msra.mxu1 %v3646_v11 }
 0x20d   : > { %2542 = vmatmul.mubr.f32.vlgmr.msra.gmra.mxu1 %v3604_v57 }
 0x282   : > { %v2368_v8 = vpop.f32.mrf.mxu0 }
 0x283   : > { %v1169_v38 = vadd.f32 %v2368_v8, %v1899_v61 }
 0x284   : > { %v1158_v13 = vpop.f32.mrf.mxu0 }
 0x285   : > { %v1159_v56 = vadd.f32 %v1899_v61, %v1158_v13 }
 0x28a   : > { %v2403_v25 = vpop.f32.mrf.mxu1 }
 0x28b   : > { %v1326_v12 = vadd.f32 %v2403_v25, %v1169_v38 }
 0x28c   : > { %v1319_v40 = vpop.f32.mrf.mxu1 }
 0x28d   : > { %v1320_v35 = vadd.f32 %v1319_v40, %v1159_v56 }
 0x2a3   : > { %v2438_v37 = vpop.f32.mrf.mxu0 }
 0x2a4   : > { %v1437_v36 = vadd.f32 %v2438_v37, %v1326_v12 }
 0x2a5   : > { %v1429_v59 = vpop.f32.mrf.mxu0 }
 0x2a6   : > { %v1430_v55 = vadd.f32 %v1429_v59, %v1320_v35 }
 0x2ac   : > { %v2473_v7 = vpop.f32.mrf.mxu1 }
 0x2ad   : > { %v1534_v54 = vadd.f32 %v2473_v7, %v1437_v36 }
 0x2ae   : > { %v1525_v41 = vpop.f32.mrf.mxu1 }
 0x2af   : > { %v1526_v0 = vadd.f32 %v1525_v41, %v1430_v55 }
 0x2c5   : > { %v2508_v18 = vpop.f32.mrf.mxu0 }
 0x2c6   : > { %v1659_v4 = vadd.f32 %v2508_v18, %v1534_v54 }
 0x2c7   : > { %v1652_v63 = vpop.f32.mrf.mxu0 }
 0x2c8   : > { %v1653_v17 = vadd.f32 %v1652_v63, %v1526_v0 }
 0x2cd   : > { %v2543_v5 = vpop.f32.mrf.mxu1 }
 0x2ce   : > { %v1752_v21 = vadd.f32 %v2543_v5, %v1659_v4 }
 0x2cf   : > { %v1745_v23 = vpop.f32.mrf.mxu1 }
 0x2d0   : > { %1756 = vst [vmem:[%s3104_s28 + $0x8] sm:$0xff] %v1752_v21  ;;  %v1746_v24 = vadd.f32 %v1745_v23, %v1653_v17 }
 0x2d2   : > { %1755 = vst [vmem:[%s3104_s28] sm:$0xff] %v1746_v24 }
 0x2d3   : > { %2765 = shalt.err (!%p2762_p2)
}
 0x2d4   : > { %s2766_s5 = scalar_lea.hbm %s3850_s24, 256  ;;  %s2770_s13 = scalar_lea.hbm %s3968_s15, 1024 }
 0x2d5   : > { %p2767_p4 = scmp.ne.s32.totalorder %s3850_s24, %s2766_s5  ;;  %p2771_p10 = scmp.lt.s32.totalorder %s3850_s24, %s3968_s15 }
 0x2d6   : > { %p2772_p6 = scmp.lt.s32.totalorder %s2770_s13, %s2766_s5 }
 0x2d7   : > { %p2768_p13 = pnand %p2767_p4, %p2993_p7 }
 0x2d8   : > { %p2773_p9 = por %p2772_p6, %p2771_p10 }
 0x2d9   : > { %p2769_p8 = pneg %p2768_p13 }
 0x2db   : > { %p2774_p1 = pnand %p2773_p9, %p2769_p8 }
 0x2dd   : > { %2777 = shalt.err (!%p2774_p1)
}
 0x2de   : > { %s2884_s16 = smov 128   ;;  %s2885_s20 = smov 256  }
 0x2df   : > { %s2886_s10 = smov 8  }
 0x2e0   : > { %2554 = dma.vmem_to_hbm [thread:$0]  (%p2993_p7), %s3852_s21, 256, %s3850_s24, %s3858_s27, %s2884_s16, %s2885_s20, %s2886_s10  }
 0x2e1 PF: > { %s3969_s12 = sld [smem:[#allocation13_spill]]  ;;  %p2576_p3 = scmp.ge.s32.totalorder %s2876_s7, 2 }
 0x2e2   : > { %s3970_s8 = sld [smem:[#allocation17_spill]] }
 0x2e7   : > { %s1788_s1 = sand.u32 1, %s3969_s12  }
 0x2e8   : > { %p3971_p11 = scmp.ne.s32.totalorder %s3970_s8, 0  ;;  %s1789_s4 = scalar_lea.sflag [#allocation5], %s1788_s1 }
 0x2ea   : > { %p2568_p5 = pnand %p2576_p3, %p3971_p11 }
 0x2ec   : > { %p2569_p12 = pneg %p2568_p5 }
 0x2ee   : > { %2831 = dma.done.wait (%p2569_p12), %s1789_s4, 256  }
 0x2ef   : > { %2833 = vsyncadd (%p2569_p12), %s1789_s4, 4294967040  ;;  %s23_s7 = sadd.s32 1, %s2876_s7   ;;  %s3972_s27 = sld [smem:[#allocation15_spill]] }
 0x2f0   : > { %p20_p0 = scmp.ge.s32.totalorder %s23_s7, 6   ;;  %s3973_s19 = sld [smem:[#allocation18_spill]] }
 0x2f1   : > { %s3974_s21 = smov %s2840_s22  ;;  %s3975_s22 = smov %s2844_s23 }
 0x2f2   : > { %s3976_s23 = smov %s3070_s29  ;;  %s3977_s24 = smov %s2852_s25 }
 0x2f3   : > { %s3978_s25 = smov %s2856_s26  ;;  %s3979_s26 = smov %s3065_s6 }
 0x2f4   : > { %s3980_s28 = smov %s2872_s30  ;;  %s3982_s30 = smov %s3988_s17 }
 0x2f5   :  { %22 = sbr.rel (!%p20_p0) target bundleno = 15 (0xf), region = 103 }
 0x2f6   : > { %s3981_s29 = smov %s3973_s19 }
 0x2fa   :  { %1794 = vsyncpa [#allocation4], 1 }
 0x2fb   :  { %1796 = vsyncpa [#allocation4 + $0x1], 1 }
 0x2fc   :  { %1797 = vsyncpa [#allocation7], 1 }
 0x2fd   :  { %1798 = vsyncpa [#allocation5], 1 }
 0x2fe   :  { %1800 = vsyncpa [#allocation5 + $0x1], 1 }

</bundles_post_ra>
